<compile_context>
chip_gen: v5e
topology: v5e:2x2
jax: 0.10.0
libtpu: 0.0.40
codegen_flags: <defaults>
</compile_context>

<pallas_src>
import functools

import jax
import jax.numpy as jnp
from jax.experimental import pallas as pl
from jax.experimental.pallas import tpu as pltpu


# --------------------------------------------------------------------------
# alpha (power) fast paths — keep the work on the 4-slot VALU / single-pass
# sqrt instead of the exp+log generic pow on the single EUP slot.
# --------------------------------------------------------------------------
def _int_pow(x, n: int):
    """x ** n for integer n >= 1 via binary exponentiation (VPU multiplies)."""
    result = None
    base = x
    while n:
        if n & 1:
            result = base if result is None else result * base
        n >>= 1
        if n:
            base = base * base
    return result


def _alpha_power(x, alpha: float):
    """x ** alpha, compile-time specialized."""
    if alpha == 1.0:
        return x
    a_abs = abs(alpha)
    n2 = a_abs * 2.0
    if n2 == int(n2) and 1 <= int(n2) <= 128:
        k, half = divmod(int(n2), 2)
        y = _int_pow(x, k) if k else None
        if half:
            s = jnp.sqrt(x)          # NaN for x < 0, matching torch `**`
            y = s if y is None else y * s
        if alpha < 0:
            y = 1.0 / y
        return y
    # TODO(synk): irrational alpha falls back to exp/log pow (2 extra EUP
    # passes per element); NaN for negative inputs, same as torch `**`.
    return x ** alpha


# --------------------------------------------------------------------------
# Kernel body
# --------------------------------------------------------------------------
def _spatial_softmax_kernel(x_ref, o_ref, *, temp: float, alpha: float,
                            spatial: int):
    # x_ref / o_ref: (row_block, s_pad) VMEM tiles, native dtype on HBM/VMEM.
    # Upcast to f32 only in-register.
    x = x_ref[...].astype(jnp.float32)
    if temp != 1.0:                      # compile-time branch (mirrors module)
        x = x * temp
    if alpha != 1.0:
        x = _alpha_power(x, alpha)
    s_pad = x.shape[-1]
    if spatial != s_pad:
        # lane-padded block: mask padded lanes to -inf so they contribute
        # exp(-inf) = 0 to the softmax (also scrubs any garbage/NaN there).
        lane = jax.lax.broadcasted_iota(jnp.int32, x.shape, dimension=1)
        x = jnp.where(lane < spatial, x, -jnp.inf)
    # numerically-stable softmax along the lane (spatial) axis
    m = jnp.max(x, axis=-1, keepdims=True)
    e = jnp.exp(x - m)
    s = jnp.sum(e, axis=-1, keepdims=True)
    # approx=True -> EUP vrcp in its own VLIW slot (~1e-4 rel err)
    o_ref[...] = (e * pl.reciprocal(s, approx=True)).astype(o_ref.dtype)


# --------------------------------------------------------------------------
# Block sizing — generation aware
# --------------------------------------------------------------------------
_GEN_PARAMS = {
    # gen: (total VMEM budget for blocks + f32 temps,
    #       per-step native block-size target,
    #       min total grid steps for pipeline/megacore overlap,
    #       scoped-vmem ceiling passed to the compiler)
    "v7x":     (36 << 20, 6 << 20, 8, 52 << 20),   # 64 MiB VMEM/TC, 2 TCs
    "v6e":     (64 << 20, 4 << 20, 4, 100 << 20),  # 128 MiB VMEM
    "v5p":     (64 << 20, 4 << 20, 4, 100 << 20),
    "v5e":     (64 << 20, 2 << 20, 4, 100 << 20),
    "unknown": (28 << 20, 4 << 20, 4, 48 << 20),   # conservative default
}


def _tpu_generation() -> str:
    try:
        kind = jax.devices()[0].device_kind.lower()
    except Exception:
        return "unknown"
    if "v7" in kind:
        return "v7x"
    if "v6" in kind:
        return "v6e"
    if "v5" in kind:
        return "v5e" if ("lite" in kind or "v5e" in kind) else "v5p"
    return "unknown"


def _round_up(v: int, m: int) -> int:
    return ((v + m - 1) // m) * m


def _choose_row_block(rows: int, s_pad: int, dtype, gen: str) -> int:
    """Pick a large, sublane-aligned row block, budgeting in+out double
    buffers AND the two f32 intermediates the kernel materializes."""
    budget, target_bytes, min_steps, _ = _GEN_PARAMS.get(gen, _GEN_PARAMS["unknown"])
    itemsize = jnp.dtype(dtype).itemsize
    # sublane packing: 8 rows for 32-bit, 16 for bf16, 32 for int8/fp8
    packing = 8 * max(1, 4 // itemsize)
    native_row = s_pad * itemsize            # one row of the in/out VMEM tile
    temp_row = 2 * s_pad * 4                 # f32 intermediates (x, e) per row
    per_row = 4 * native_row + temp_row      # double-buffered in + out + temps
    max_rows_vmem = max(packing, budget // per_row)
    target_rows = max(packing, target_bytes // native_row)
    rb = min(target_rows, max_rows_vmem)
    # Pipeline depth: keep >= min_steps grid steps (>= min_steps/2 per v7x TC)
    # whenever the block can stay >= ~1 MiB; for small tensors on v7x still
    # split in two so both TensorCores get work.
    rb_steps = pl.cdiv(rows, min_steps)
    if rb_steps * native_row >= (1 << 20):
        rb = min(rb, rb_steps)
    elif gen == "v7x" and rows >= 2 * packing:
        rb = min(rb, pl.cdiv(rows, 2))
    rb = max(packing, (rb // packing) * packing)
    rb = min(rb, _round_up(rows, packing))   # never bigger than the padded rows
    return int(rb)


# --------------------------------------------------------------------------
# Wrapper
# --------------------------------------------------------------------------
def spatial_softmax(x: jax.Array, temperature: float = 1.0, alpha: float = 1.0,
                    *, row_block: int | None = None) -> jax.Array:
    """Pallas TPU SpatialSoftmax. x is NCHW (or any (B, C, *spatial))."""
    rows = x.shape[0] * x.shape[1]
    spatial = 1
    for d in x.shape[2:]:
        spatial *= d
    x2d = x.reshape(rows, spatial)

    gen = _tpu_generation()
    itemsize = jnp.dtype(x.dtype).itemsize
    # lane-dense block: pad the block's lane dim up to a multiple of 128 and
    # mask the padded lanes in-kernel (no wrapper pad/slice => no extra HBM pass)
    s_pad = max(128, _round_up(spatial, 128))

    if row_block is None:
        row_block = _choose_row_block(rows, s_pad, x.dtype, gen)

    # TODO(synk): if even a minimal (packing-sized) row block with its f32
    # temps would not fit in VMEM (extremely large S), add a spatial grid axis
    # with an online-softmax (m/l scratch, pl.when init/finalize) fallback.

    # Scoped VMEM must cover double-buffered in+out tiles plus the two f32
    # intermediates, with headroom, capped below the generation's physical VMEM.
    _, _, _, vmem_ceiling = _GEN_PARAMS.get(gen, _GEN_PARAMS["unknown"])
    block_native = row_block * s_pad * itemsize
    block_temps = 2 * row_block * s_pad * 4
    vmem_limit = int(min(vmem_ceiling,
                         max(16 << 20, 4 * block_native + block_temps + (4 << 20))))

    kernel = functools.partial(_spatial_softmax_kernel,
                               temp=float(temperature), alpha=float(alpha),
                               spatial=int(spatial))

    n_elems = rows * spatial
    cost = pl.CostEstimate(
        flops=6 * n_elems,                       # mul/sub/max/sum/scale
        transcendentals=n_elems,                 # exp (+ per-row vrcp, negligible)
        bytes_accessed=2 * n_elems * itemsize,   # read + write, native dtype
    )

    # Ragged final row block (rows % row_block != 0) and the padded lane tail
    # are masked by Pallas on store; garbage rows/lanes are never written back.
    out2d = pl.pallas_call(
        kernel,
        out_shape=jax.ShapeDtypeStruct((rows, spatial), x.dtype),
        grid_spec=pltpu.PrefetchScalarGridSpec(
            num_scalar_prefetch=0,
            grid=(pl.cdiv(rows, row_block),),
            in_specs=[pl.BlockSpec((row_block, s_pad), lambda i: (i, 0))],
            out_specs=pl.BlockSpec((row_block, s_pad), lambda i: (i, 0)),
        ),
        compiler_params=pltpu.CompilerParams(
            dimension_semantics=("parallel",),
            vmem_limit_bytes=vmem_limit),
        cost_estimate=cost,
    )(x2d)

    return out2d.reshape(x.shape)


# --------------------------------------------------------------------------
# Pure-JAX reference + tests
# --------------------------------------------------------------------------
def _reference(x, temperature=1.0, alpha=1.0):
    b, c = x.shape[0], x.shape[1]
    r = x.reshape(b, c, -1).astype(jnp.float32)
    if temperature != 1.0:
        r = r * temperature
    if alpha != 1.0:
        r = r ** alpha
    return jax.nn.softmax(r, axis=-1).astype(x.dtype).reshape(x.shape)


if __name__ == "__main__":
    key = jax.random.PRNGKey(0)

    # 1) default module parameters (temperature=1.0, alpha=1.0), f32 NCHW
    B, C, H, W = 2, 4, 16, 16
    x = jax.random.normal(key, (B, C, H, W), dtype=jnp.float32)
    out = jax.block_until_ready(spatial_softmax(x, temperature=1.0, alpha=1.0))
    ref = _reference(x, 1.0, 1.0)
    assert out.shape == x.shape and out.dtype == x.dtype
    assert jnp.allclose(out, ref, atol=3e-4, rtol=2e-3)

    # 2) non-default temp + integer alpha (VPU binary-exponentiation path);
    #    works on signed inputs just like torch `**`
    out2 = jax.block_until_ready(spatial_softmax(x, temperature=0.5, alpha=2.0))
    ref2 = _reference(x, 0.5, 2.0)
    assert jnp.allclose(out2, ref2, atol=3e-4, rtol=2e-3)

    # 2b) half-integer alpha (sqrt composition path) on positive inputs
    x_pos = jnp.abs(x) + 0.1
    out2b = jax.block_until_ready(spatial_softmax(x_pos, temperature=0.7, alpha=2.5))
    ref2b = _reference(x_pos, 0.7, 2.5)
    assert jnp.allclose(out2b, ref2b, atol=3e-4, rtol=2e-3)

    # 3) ragged row count (B*C not a multiple of the row block): masked final
    #    row block, no wrapper pad/slice
    x3 = jax.random.normal(jax.random.PRNGKey(1), (3, 5, 16, 16), dtype=jnp.float32)
    out3 = jax.block_until_ready(spatial_softmax(x3))
    ref3 = _reference(x3)
    assert jnp.allclose(out3, ref3, atol=3e-4, rtol=2e-3)

    # 4) bf16 input: native-dtype HBM I/O, f32-only-in-register math
    x4 = jax.random.normal(jax.random.PRNGKey(2), (2, 8, 16, 16), dtype=jnp.bfloat16)
    out4 = jax.block_until_ready(spatial_softmax(x4))
    ref4 = _reference(x4)
    assert out4.dtype == jnp.bfloat16
    assert jnp.allclose(out4.astype(jnp.float32), ref4.astype(jnp.float32),
                        atol=2e-3, rtol=2e-2)

    # 5) spatial size not a multiple of 128 (14x14 = 196): lane-padded block
    #    with in-kernel -inf masking of the padded lanes
    x5 = jax.random.normal(jax.random.PRNGKey(3), (2, 4, 14, 14), dtype=jnp.float32)
    out5 = jax.block_until_ready(spatial_softmax(x5, temperature=0.5))
    ref5 = _reference(x5, 0.5)
    assert jnp.allclose(out5, ref5, atol=3e-4, rtol=2e-3)

    # 5b) spatial size smaller than one lane group (8x8 = 64)
    x6 = jax.random.normal(jax.random.PRNGKey(4), (2, 3, 8, 8), dtype=jnp.float32)
    out6 = jax.block_until_ready(spatial_softmax(x6))
    ref6 = _reference(x6)
    assert jnp.allclose(out6, ref6, atol=3e-4, rtol=2e-3)

    print("KERNEL_OK")
</pallas_src>

<mosaic_0001>
module attributes {stable_mosaic.version = 11 : i64} {
  func.func @_spatial_softmax_kernel(%arg0: i32, %arg1: memref<8x256xf32, #tpu.memory_space<vmem>>, %arg2: memref<8x256xf32, #tpu.memory_space<vmem>>) attributes {dimension_semantics = [#tpu.dimension_semantics<parallel>], iteration_bounds = array<i64: 1>, scalar_prefetch = 0 : i64, scratch_operands = 0 : i64, tpu.core_type = #tpu.core_type<tc>, window_params = [{transform_indices = @transform_0, window_bounds = array<i64: 8, 256>}, {transform_indices = @transform_1, window_bounds = array<i64: 8, 256>}]} {
    %c0 = arith.constant 0 : index
    %c0_0 = arith.constant 0 : index
    %0 = vector.load %arg1[%c0, %c0_0] : memref<8x256xf32, #tpu.memory_space<vmem>>, vector<8x256xf32>
    %cst = arith.constant dense<0xFF800000> : vector<8xf32>
    %1 = vector.multi_reduction <maximumf>, %0, %cst [1] : vector<8x256xf32> to vector<8xf32>
    %2 = vector.shape_cast %1 : vector<8xf32> to vector<8x1xf32>
    %3 = vector.broadcast %2 : vector<8x1xf32> to vector<8x256xf32>
    %4 = arith.subf %0, %3 : vector<8x256xf32>
    %5 = math.exp %4 : vector<8x256xf32>
    %cst_1 = arith.constant dense<0.000000e+00> : vector<8xf32>
    %6 = vector.multi_reduction <add>, %5, %cst_1 [1] : vector<8x256xf32> to vector<8xf32>
    %7 = vector.shape_cast %6 : vector<8xf32> to vector<8x1xf32>
    %8 = tpu.reciprocal %7 {approx = true} : vector<8x1xf32> -> vector<8x1xf32>
    %9 = vector.broadcast %8 : vector<8x1xf32> to vector<8x256xf32>
    %10 = arith.mulf %5, %9 : vector<8x256xf32>
    %c0_2 = arith.constant 0 : index
    %c0_3 = arith.constant 0 : index
    %11 = vector.load %arg2[%c0_2, %c0_3] : memref<8x256xf32, #tpu.memory_space<vmem>>, vector<8x256xf32>
    tpu.vector_store %arg2[%c0_2, %c0_3], %10 {strides = array<i32>} : memref<8x256xf32, #tpu.memory_space<vmem>>, vector<8x256xf32>,
    return
  }
  func.func @transform_0(%arg0: i32) -> (i32, i32) {
    %c0_i32 = arith.constant 0 : i32
    %c0_i32_0 = arith.constant 0 : i32
    return %arg0, %c0_i32 : i32, i32
  }
  func.func @transform_1(%arg0: i32) -> (i32, i32) {
    %c0_i32 = arith.constant 0 : i32
    %c0_i32_0 = arith.constant 0 : i32
    return %arg0, %c0_i32 : i32, i32
  }
}

</mosaic_0001>

<bundles_post_ra>
// kernel: tpu_custom_call.1
= control target key start
LH: loop header
LB: loop body
LE: loop exit
PB: predicated region body
PF: predicated region fallthrough
CT: control target
= control target key end

     0   :  { %6 = vsyncpa [#allocation3], 0  ;;  %s137_s0 = inlined_call_operand.hbm [shape: f32[8,256], index: 0, kind: input, shape index: {}]   ;;  %s138_s1 = inlined_call_operand.hbm [shape: f32[8,256], index: 1, kind: output, shape index: {}]  }
   0x1   :  { %7 = vsyncpa [#allocation4], 0  ;;  %s13_s8 = sshll.u32 %s137_s0, 4  ;;  %s119_s9 = smov [#allocation2]   ;;  %s14_s8 = int_to_ptr.hbm [resolvable:$true] %s13_s8 }
   0x2   :  { %s15_s10 = sshll.u32 %s119_s9, 4  ;;  %s16_s10 = int_to_ptr.vmem [resolvable:$true] %s15_s10 }
   0x3   :  { %18 = dma.hbm_to_vmem [thread:$0]  %s14_s8, 256, %s16_s10, [#allocation3]  }
   0x4   :  { %115 = dma.done.wait [#allocation3], 256  }
   0x5   :  { %116 = vsyncadd [#allocation3], 4294967040  ;;  %v23_v0 = vld [vmem:[#allocation2] sm:$0xff]  ;;  %v24_v1 = vld [vmem:[#allocation2 + $0x8] sm:$0xff]  ;;  %s120_s0 = smov [#allocation5]   ;;  %s49_s14 = sshll.u32 %s138_s1, 4  ;;  %s50_s14 = int_to_ptr.hbm [resolvable:$true] %s49_s14 }
   0x6   :  { %v25_v2 = vmax.f32 %v23_v0, %v24_v1  ;;  %s47_s11 = sshll.u32 %s120_s0, 4  ;;  %s48_s11 = int_to_ptr.vmem [resolvable:$true] %s47_s11 }
   0x8   :  { %26 = vmax.xlane.f32.xlu0 %v25_v2 }
  0x7b   :  { %v27_v3 = vpop.xlane.xlu0 %26 }
  0x7c   :  { %v28_v4 = vsub.f32 %v23_v0, %v27_v3  ;;  %v29_v5 = vsub.f32 %v24_v1, %v27_v3 }
  0x7e   :  { %v30_v6 = vmul.f32 1.442695, %v28_v4  ;;  %v32_v7 = vmul.f32 1.442695, %v29_v5 }
  0x80   :  { %61 = vpow2.f32 %v30_v6 }
  0x81   :  { %63 = vpow2.f32 %v32_v7 }
  0x86   :  { %v62_v8 = vpop.eup %61 }
  0x87   :  { %v64_v9 = vpop.eup %63 }
  0x88   :  { %v34_v10 = vadd.f32 %v64_v9, %v62_v8 }
  0x8a   :  { %35 = vadd.xlane.f32.xlu0 %v34_v10 }
  0xfd   :  { %v36_v11 = vpop.xlane.xlu0 %35 }
  0xfe   :  { %65 = vrcp.f32 %v36_v11 }
 0x104   :  { %v66_v12 = vpop.eup %65 }
 0x105   :  { %v38_v13 = vmul.f32 %v66_v12, %v62_v8  ;;  %v39_v14 = vmul.f32 %v66_v12, %v64_v9 }
 0x107   :  { %40 = vst [vmem:[#allocation5] sm:$0xff] %v38_v13 }
 0x108   :  { %41 = vst [vmem:[#allocation5 + $0x8] sm:$0xff] %v39_v14 }
 0x109   :  { %52 = dma.vmem_to_hbm [thread:$0]  %s48_s11, 256, %s50_s14, [#allocation4]  }
 0x10a   :  { %117 = dma.done.wait [#allocation4], 256  }
 0x10b   :  { %118 = vsyncadd [#allocation4], 4294967040 }
 0x10c   :  { %57 = vsyncpa [#allocation3], 1 }
 0x10d   :  { %58 = vsyncpa [#allocation4], 1 }

</bundles_post_ra>
